<compile_context>
chip_gen: v7x
topology: tpu7x:2x2x1
jax: 0.10.0
libtpu: 0.0.40
codegen_flags: <defaults>
</compile_context>

<pallas_src>
import functools

import jax
import jax.numpy as jnp
from jax.experimental import pallas as pl
from jax.experimental.pallas import tpu as pltpu

EPS = 1e-5  # nn.LayerNorm default eps


def _round_up(x, m):
    return ((x + m - 1) // m) * m


def _prenorm_linear_kernel(x_ref, gamma_ref, beta_ref, w_ref, bias_ref, o_ref,
                           *, d_true):
    # x_ref:     (tm, Dp)  tile of rows (Dp = D padded to multiple of 128)
    # gamma_ref: (1,  Dp)  LayerNorm weight (zero-padded)
    # beta_ref:  (1,  Dp)  LayerNorm bias   (zero-padded)
    # w_ref:     (Dp, Dp)  Linear weight, (in, out), bf16, zero-padded
    # bias_ref:  (1,  Dp)  Linear bias      (zero-padded)
    x = x_ref[...].astype(jnp.float32)
    dp = x.shape[-1]
    inv_d = 1.0 / float(d_true)

    # --- LayerNorm over the true feature dim (biased variance, f32 math) ---
    # Padded feature columns are exactly zero, so the unmasked sum scaled by
    # 1/d_true is the true mean; only `centered` needs masking for variance.
    mean = jnp.sum(x, axis=-1, keepdims=True) * inv_d
    centered = x - mean
    if d_true != dp:
        col = jax.lax.broadcasted_iota(jnp.int32, (1, dp), 1)
        centered = jnp.where(col < d_true, centered, 0.0)
    var = jnp.sum(centered * centered, axis=-1, keepdims=True) * inv_d
    xhat = centered * jax.lax.rsqrt(var + EPS)          # rsqrt -> EUP slot
    y = xhat * gamma_ref[...].astype(jnp.float32) + beta_ref[...].astype(jnp.float32)

    # --- fn: Linear(dim, dim), bf16 operands on the MXU, f32 accumulation ---
    out = jnp.dot(y.astype(w_ref.dtype), w_ref[...],
                  preferred_element_type=jnp.float32)
    out = out + bias_ref[...].astype(jnp.float32)

    o_ref[...] = out.astype(o_ref.dtype)


def prenorm_forward(x, gamma, beta, w, bias, *, tm=512,
                    matmul_dtype=jnp.bfloat16):
    """x: (B, N, D). Returns fn(LayerNorm(x)) with fn = Linear(D, D)."""
    B, N, D = x.shape
    M = B * N

    Dp = _round_up(D, 128)                       # lane-dense feature dim
    tm_eff = max(8, min(tm, _round_up(M, 8)))    # row tile (sublane-aligned)
    Mp = _round_up(M, tm_eff)                    # padded row count

    x2 = x.reshape(M, D)
    if Mp != M or Dp != D:
        x2 = jnp.pad(x2, ((0, Mp - M), (0, Dp - D)))

    def pad_vec(v):
        v = v.reshape(1, D)
        if Dp != D:
            v = jnp.pad(v, ((0, 0), (0, Dp - D)))
        return v

    gamma2 = pad_vec(gamma)
    beta2 = pad_vec(beta)
    bias2 = pad_vec(bias)
    w2 = w
    if Dp != D:
        w2 = jnp.pad(w2, ((0, Dp - D), (0, Dp - D)))
    w2 = w2.astype(matmul_dtype)                 # weight cast hoisted out of kernel

    # VMEM budget: x + out double-buffered, weight double-buffered, params.
    est = (2 * tm_eff * Dp * 4                   # x tiles (f32), 2 buffers
           + 2 * tm_eff * Dp * x.dtype.itemsize  # out tiles, 2 buffers
           + 2 * Dp * Dp * jnp.dtype(matmul_dtype).itemsize
           + 8 * Dp * 4)
    vmem_limit = max(32 << 20, min(int(est * 1.5) + (1 << 20), 100 << 20))

    cost = pl.CostEstimate(
        flops=2 * Mp * Dp * Dp + 10 * Mp * Dp,
        transcendentals=Mp,
        bytes_accessed=(x2.size * x2.dtype.itemsize
                        + w2.size * w2.dtype.itemsize
                        + Mp * Dp * x.dtype.itemsize),
    )

    kernel = functools.partial(_prenorm_linear_kernel, d_true=D)

    out = pl.pallas_call(
        kernel,
        out_shape=jax.ShapeDtypeStruct((Mp, Dp), x.dtype),
        grid_spec=pltpu.PrefetchScalarGridSpec(
            num_scalar_prefetch=0,
            grid=(Mp // tm_eff,),
            in_specs=[
                pl.BlockSpec((tm_eff, Dp), lambda i: (i, 0)),  # x rows
                pl.BlockSpec((1, Dp), lambda i: (0, 0)),       # gamma
                pl.BlockSpec((1, Dp), lambda i: (0, 0)),       # beta
                pl.BlockSpec((Dp, Dp), lambda i: (0, 0)),      # linear weight
                pl.BlockSpec((1, Dp), lambda i: (0, 0)),       # linear bias
            ],
            out_specs=pl.BlockSpec((tm_eff, Dp), lambda i: (i, 0)),
        ),
        compiler_params=pltpu.CompilerParams(
            dimension_semantics=("parallel",),
            vmem_limit_bytes=vmem_limit),
        cost_estimate=cost,
    )(x2, gamma2, beta2, w2, bias2)

    return out[:M, :D].reshape(B, N, D)


def reference_forward(x, gamma, beta, w, bias):
    mean = jnp.mean(x, axis=-1, keepdims=True)
    var = jnp.mean((x - mean) ** 2, axis=-1, keepdims=True)
    xhat = (x - mean) / jnp.sqrt(var + EPS)
    y = xhat * gamma + beta
    return jnp.einsum("bnd,de->bne", y, w) + bias


if __name__ == "__main__":
    key = jax.random.PRNGKey(0)
    B, N, D = 2, 8, 32
    kx, kw, kb = jax.random.split(key, 3)

    x = jax.random.normal(kx, (B, N, D), dtype=jnp.float32)

    # LayerNorm params: PyTorch default init (weight=1, bias=0).
    gamma = jnp.ones((D,), dtype=jnp.float32)
    beta = jnp.zeros((D,), dtype=jnp.float32)

    # fn (Linear dim->dim) params: deterministic synthetic init.
    w = jax.random.normal(kw, (D, D), dtype=jnp.float32) * 0.05
    bias = jax.random.normal(kb, (D,), dtype=jnp.float32) * 0.01

    out = prenorm_forward(x, gamma, beta, w, bias)
    out = jax.block_until_ready(out)

    ref = reference_forward(x, gamma, beta, w, bias)
    assert out.shape == (B, N, D)
    # bf16 MXU operands => compare against the f32 reference at bf16 tolerance.
    assert jnp.allclose(out, ref, atol=1e-2, rtol=1e-2)

    print("KERNEL_OK")
</pallas_src>

<mosaic_0001>
module attributes {stable_mosaic.version = 11 : i64} {
  func.func @_prenorm_linear_kernel(%arg0: i32, %arg1: memref<16x128xf32, #tpu.memory_space<vmem>>, %arg2: memref<1x128xf32, #tpu.memory_space<vmem>>, %arg3: memref<1x128xf32, #tpu.memory_space<vmem>>, %arg4: memref<128x128xbf16, #tpu.memory_space<vmem>>, %arg5: memref<1x128xf32, #tpu.memory_space<vmem>>, %arg6: memref<16x128xf32, #tpu.memory_space<vmem>>) attributes {dimension_semantics = [#tpu.dimension_semantics<parallel>], iteration_bounds = array<i64: 1>, scalar_prefetch = 0 : i64, scratch_operands = 0 : i64, tpu.core_type = #tpu.core_type<tc>, window_params = [{transform_indices = @transform_0, window_bounds = array<i64: 16, 128>}, {pipeline_mode = #tpu.pipeline_mode<synchronous>, transform_indices = @transform_1, window_bounds = array<i64: 1, 128>}, {pipeline_mode = #tpu.pipeline_mode<synchronous>, transform_indices = @transform_2, window_bounds = array<i64: 1, 128>}, {pipeline_mode = #tpu.pipeline_mode<synchronous>, transform_indices = @transform_3, window_bounds = array<i64: 128, 128>}, {pipeline_mode = #tpu.pipeline_mode<synchronous>, transform_indices = @transform_4, window_bounds = array<i64: 1, 128>}, {transform_indices = @transform_5, window_bounds = array<i64: 16, 128>}]} {
    %c0 = arith.constant 0 : index
    %c0_0 = arith.constant 0 : index
    %0 = vector.load %arg1[%c0, %c0_0] : memref<16x128xf32, #tpu.memory_space<vmem>>, vector<16x128xf32>
    %cst = arith.constant dense<0.000000e+00> : vector<16xf32>
    %1 = vector.multi_reduction <add>, %0, %cst [1] : vector<16x128xf32> to vector<16xf32>
    %2 = vector.shape_cast %1 : vector<16xf32> to vector<16x1xf32>
    %cst_1 = arith.constant 3.125000e-02 : f32
    %3 = vector.broadcast %cst_1 : f32 to vector<16x1xf32>
    %4 = arith.mulf %2, %3 : vector<16x1xf32>
    %5 = vector.broadcast %4 : vector<16x1xf32> to vector<16x128xf32>
    %6 = arith.subf %0, %5 : vector<16x128xf32>
    %7 = tpu.iota {dimensions = array<i32: 1>} : vector<1x128xi32>
    %c32_i32 = arith.constant 32 : i32
    %8 = vector.broadcast %c32_i32 : i32 to vector<1x128xi32>
    %9 = arith.cmpi slt, %7, %8 : vector<1x128xi32>
    %cst_2 = arith.constant 0.000000e+00 : f32
    %10 = vector.shape_cast %9 : vector<1x128xi1> to vector<1x128xi1>
    %11 = vector.broadcast %10 : vector<1x128xi1> to vector<16x128xi1>
    %12 = vector.broadcast %cst_2 : f32 to vector<16x128xf32>
    %13 = arith.select %11, %6, %12 : vector<16x128xi1>, vector<16x128xf32>
    %14 = arith.mulf %13, %13 : vector<16x128xf32>
    %cst_3 = arith.constant dense<0.000000e+00> : vector<16xf32>
    %15 = vector.multi_reduction <add>, %14, %cst_3 [1] : vector<16x128xf32> to vector<16xf32>
    %16 = vector.shape_cast %15 : vector<16xf32> to vector<16x1xf32>
    %cst_4 = arith.constant 3.125000e-02 : f32
    %17 = vector.broadcast %cst_4 : f32 to vector<16x1xf32>
    %18 = arith.mulf %16, %17 : vector<16x1xf32>
    %cst_5 = arith.constant 9.99999974E-6 : f32
    %19 = vector.broadcast %cst_5 : f32 to vector<16x1xf32>
    %20 = arith.addf %18, %19 : vector<16x1xf32>
    %21 = math.rsqrt %20 : vector<16x1xf32>
    %22 = vector.broadcast %21 : vector<16x1xf32> to vector<16x128xf32>
    %23 = arith.mulf %13, %22 : vector<16x128xf32>
    %c0_6 = arith.constant 0 : index
    %c0_7 = arith.constant 0 : index
    %24 = vector.load %arg2[%c0_6, %c0_7] : memref<1x128xf32, #tpu.memory_space<vmem>>, vector<1x128xf32>
    %25 = vector.broadcast %24 : vector<1x128xf32> to vector<16x128xf32>
    %26 = arith.mulf %23, %25 : vector<16x128xf32>
    %c0_8 = arith.constant 0 : index
    %c0_9 = arith.constant 0 : index
    %27 = vector.load %arg3[%c0_8, %c0_9] : memref<1x128xf32, #tpu.memory_space<vmem>>, vector<1x128xf32>
    %28 = vector.broadcast %27 : vector<1x128xf32> to vector<16x128xf32>
    %29 = arith.addf %26, %28 : vector<16x128xf32>
    %30 = arith.truncf %29 : vector<16x128xf32> to vector<16x128xbf16>
    %c0_10 = arith.constant 0 : index
    %c0_11 = arith.constant 0 : index
    %31 = vector.load %arg4[%c0_10, %c0_11] : memref<128x128xbf16, #tpu.memory_space<vmem>>, vector<128x128xbf16>
    %cst_12 = arith.constant dense<0.000000e+00> : vector<16x128xf32>
    %32 = tpu.matmul %30, %31, %cst_12 {dimension_numbers = #tpu.dot_dimension_numbers<[1], [0], [0], [1], [0, 0, 1, 1], [], []>} : vector<16x128xbf16>, vector<128x128xbf16>, vector<16x128xf32> -> vector<16x128xf32>
    %c0_13 = arith.constant 0 : index
    %c0_14 = arith.constant 0 : index
    %33 = vector.load %arg5[%c0_13, %c0_14] : memref<1x128xf32, #tpu.memory_space<vmem>>, vector<1x128xf32>
    %34 = vector.broadcast %33 : vector<1x128xf32> to vector<16x128xf32>
    %35 = arith.addf %32, %34 : vector<16x128xf32>
    %c0_15 = arith.constant 0 : index
    %c0_16 = arith.constant 0 : index
    %36 = vector.load %arg6[%c0_15, %c0_16] : memref<16x128xf32, #tpu.memory_space<vmem>>, vector<16x128xf32>
    tpu.vector_store %arg6[%c0_15, %c0_16], %35 {strides = array<i32>} : memref<16x128xf32, #tpu.memory_space<vmem>>, vector<16x128xf32>,
    return
  }
  func.func @transform_0(%arg0: i32) -> (i32, i32) {
    %c0_i32 = arith.constant 0 : i32
    %c0_i32_0 = arith.constant 0 : i32
    return %arg0, %c0_i32 : i32, i32
  }
  func.func @transform_1(%arg0: i32) -> (i32, i32) {
    %c0_i32 = arith.constant 0 : i32
    %c0_i32_0 = arith.constant 0 : i32
    %c0_i32_1 = arith.constant 0 : i32
    return %c0_i32, %c0_i32_0 : i32, i32
  }
  func.func @transform_2(%arg0: i32) -> (i32, i32) {
    %c0_i32 = arith.constant 0 : i32
    %c0_i32_0 = arith.constant 0 : i32
    %c0_i32_1 = arith.constant 0 : i32
    return %c0_i32, %c0_i32_0 : i32, i32
  }
  func.func @transform_3(%arg0: i32) -> (i32, i32) {
    %c0_i32 = arith.constant 0 : i32
    %c0_i32_0 = arith.constant 0 : i32
    %c0_i32_1 = arith.constant 0 : i32
    return %c0_i32, %c0_i32_0 : i32, i32
  }
  func.func @transform_4(%arg0: i32) -> (i32, i32) {
    %c0_i32 = arith.constant 0 : i32
    %c0_i32_0 = arith.constant 0 : i32
    %c0_i32_1 = arith.constant 0 : i32
    return %c0_i32, %c0_i32_0 : i32, i32
  }
  func.func @transform_5(%arg0: i32) -> (i32, i32) {
    %c0_i32 = arith.constant 0 : i32
    %c0_i32_0 = arith.constant 0 : i32
    return %arg0, %c0_i32 : i32, i32
  }
}

</mosaic_0001>

<bundles_post_ra>
// kernel: tpu_custom_call.1
= control target key start
LH: loop header
LB: loop body
LE: loop exit
PB: predicated region body
PF: predicated region fallthrough
CT: control target
= control target key end

     0   :  { %10 = vsyncpa [#allocation3], 0  ;;  %s455_s0 = inlined_call_operand.hbm [shape: f32[16,128], index: 0, kind: input, shape index: {}]   ;;  %s456_s1 = inlined_call_operand.vmem [shape: f32[1,128], index: 1, kind: input, shape index: {}]   ;;  %s457_s2 = inlined_call_operand.vmem [shape: f32[1,128], index: 2, kind: input, shape index: {}]   ;;  %s458_s3 = inlined_call_operand.hbm [shape: bf16[128,128], index: 3, kind: input, shape index: {}]   ;;  %s459_s4 = inlined_call_operand.vmem [shape: f32[1,128], index: 4, kind: input, shape index: {}]   ;;  %s460_s5 = inlined_call_operand.hbm [shape: f32[16,128], index: 5, kind: output, shape index: {}]  }
   0x1   :  { %11 = vsyncpa [#allocation6], 0 }
   0x2   :  { %12 = vsyncpa [#allocation4], 0  ;;  %s365_s18 = smov [#allocation2]   ;;  %s293_s22 = scalar_lea.hbm %s455_s0, 256 }
   0x3   :  { %s18_s19 = sshll.u32 %s365_s18, 4  ;;  %p294_p0 = scmp.ne.s32.totalorder %s455_s0, %s293_s22  ;;  %s19_s19 = int_to_ptr.vmem [resolvable:$true] %s18_s19 }
   0x4   :  { %p297_p1 = scmp.lt.u32.totalorder %s293_s22, %s455_s0 }
   0x6   :  { %p299_p2 = pnand %p297_p1, %p294_p0 }
   0x8   :  { %302 = shalt.err (!%p299_p2)
}
   0x9   :  { %s303_s27 = scalar_lea.vmem %s19_s19, 256  ;;  %p308_p4 = scmp.lt.s32.totalorder %s19_s19, %s19_s19 }
   0xa   :  { %p304_p3 = scmp.ne.s32.totalorder %s19_s19, %s303_s27  ;;  %p309_p5 = scmp.lt.s32.totalorder %s303_s27, %s303_s27 }
   0xc   :  { %p310_p6 = por %p309_p5, %p308_p4 }
   0xe   :  { %p311_p7 = pnand %p310_p6, %p304_p3 }
  0x10   :  { %314 = shalt.err (!%p311_p7)
}
  0x11   :  { %s366_s28 = smov 128   ;;  %s367_s29 = smov 8  }
  0x12   :  { %24 = dma.hbm_to_vmem [thread:$0]  %s455_s0, 256, %s19_s19, [#allocation3], %s366_s28, %s366_s28, %s367_s29  }
  0x13   :  { %s368_s7 = smov [#allocation5]   ;;  %s315_s11 = scalar_lea.hbm %s458_s3, 1024 }
  0x14   :  { %s34_s8 = sshll.u32 %s368_s7, 4  ;;  %p316_p8 = scmp.ne.s32.totalorder %s458_s3, %s315_s11  ;;  %s35_s8 = int_to_ptr.vmem [resolvable:$true] %s34_s8 }
  0x15   :  { %p319_p9 = scmp.lt.u32.totalorder %s315_s11, %s458_s3 }
  0x17   :  { %p321_p10 = pnand %p319_p9, %p316_p8 }
  0x19   :  { %324 = shalt.err (!%p321_p10)
}
  0x1a   :  { %s325_s16 = scalar_lea.vmem %s35_s8, 1024  ;;  %p330_p12 = scmp.lt.s32.totalorder %s35_s8, %s35_s8 }
  0x1b   :  { %p326_p11 = scmp.ne.s32.totalorder %s35_s8, %s325_s16  ;;  %p331_p13 = scmp.lt.s32.totalorder %s325_s16, %s325_s16 }
  0x1d   :  { %p332_p0 = por %p331_p13, %p330_p12 }
  0x1f   :  { %p333_p1 = pnand %p332_p0, %p326_p11 }
  0x21   :  { %336 = shalt.err (!%p333_p1)
}
  0x22   :  { %s369_s0 = smov 64   ;;  %s370_s17 = smov 4  }
  0x23   :  { %40 = dma.hbm_to_vmem [thread:$0]  %s458_s3, 1024, %s35_s8, [#allocation6], %s369_s0, %s369_s0, %s370_s17  }
  0x24   :  { %359 = dma.done.wait [#allocation3], 256  }
  0x25   :  { %360 = vsyncadd [#allocation3], 4294967040 }
  0x26   :  { %361 = dma.done.wait [#allocation6], 1024  }
  0x27   :  { %362 = vsyncadd [#allocation6], 4294966272  ;;  %v50_v0 = vld [vmem:[#allocation2] sm:$0xff]  ;;  %v51_v1 = vld [vmem:[#allocation2 + $0x8] sm:$0xff]  ;;  %v371_v3 = vmov 0.0   ;;  %v60_v4 = vlaneseq  ;;  %vm372_vm1 = vmmov 0  }
  0x28   :  { %52 = vadd.xlane.f32.xlu0 %v50_v0  ;;  %v281_v2 = vld [vmem:[#allocation5] sm:$0xff]   ;;  %252 = vmatprep.subr.bf16.mxu0 %v371_v3  ;;  %v282_v16 = vld [vmem:[#allocation5 + $0x8] sm:$0xff]   ;;  %v283_v17 = vld [vmem:[#allocation5 + $0x10] sm:$0xff]   ;;  %s373_s25 = smov [#allocation7]  }
  0x29   :  { %253 = vmatpush3.bf16.msra.mxu0 %v281_v2  ;;  %v61_v5 = vand.u32 127, %v60_v4  ;;  %v284_v18 = vld [vmem:[#allocation5 + $0x18] sm:$0xff]   ;;  %v285_v19 = vld [vmem:[#allocation5 + $0x20] sm:$0xff]   ;;  %268 = vmatprep.mubr.msk.bf16.mxu0 %vm372_vm1, %v371_v3  ;;  %v286_v20 = vld [vmem:[#allocation5 + $0x28] sm:$0xff]   ;;  %s219_s26 = sshll.u32 %s373_s25, 4  ;;  %s220_s26 = int_to_ptr.vmem [resolvable:$true] %s219_s26 }
  0x2a   :  { %254 = vmatprep.subr.bf16.mxu0 %v371_v3  ;;  %v287_v21 = vld [vmem:[#allocation5 + $0x30] sm:$0xff]   ;;  %v288_v22 = vld [vmem:[#allocation5 + $0x38] sm:$0xff]   ;;  %p342_p3 = scmp.lt.s32.totalorder %s220_s26, %s220_s26 }
  0x2b   :  { %vm62_vm0 = vcmp.lt.s32.totalorder %v61_v5, 32  ;;  %v232_v31 = vld [vmem:[%s456_s1] ss:$0 sm:$0xff]  ;;  %s337_s1 = scalar_lea.vmem %s220_s26, 256 }
  0x2c   :  { %54 = vadd.xlane.f32.xlu0 %v51_v1  ;;  %v233_v35 = vld [vmem:[%s457_s2] ss:$0 sm:$0xff]  ;;  %p338_p2 = scmp.ne.s32.totalorder %s220_s26, %s337_s1  ;;  %p343_p4 = scmp.lt.s32.totalorder %s337_s1, %s337_s1 }
  0x2d   :  { %255 = vmatpush3.bf16.msra.mxu0 %v282_v16  ;;  %v234_v40 = vld [vmem:[%s459_s4] ss:$0 sm:$0xff] }
  0x2e   :  { %256 = vmatprep.subr.bf16.mxu0 %v371_v3  ;;  %p344_p5 = por %p343_p4, %p342_p3 }
  0x30   :  { %p345_p6 = pnand %p344_p5, %p338_p2 }
  0x31   :  { %257 = vmatpush3.bf16.msra.mxu0 %v283_v17 }
  0x32   :  { %258 = vmatprep.subr.bf16.mxu0 %v371_v3 }
  0x35   :  { %259 = vmatpush3.bf16.msra.mxu0 %v284_v18 }
  0x36   :  { %260 = vmatprep.subr.bf16.mxu0 %v371_v3 }
  0x39   :  { %261 = vmatpush3.bf16.msra.mxu0 %v285_v19 }
  0x3a   :  { %262 = vmatprep.subr.bf16.mxu0 %v371_v3 }
  0x3d   :  { %263 = vmatpush3.bf16.msra.mxu0 %v286_v20 }
  0x3e   :  { %264 = vmatprep.subr.bf16.mxu0 %v371_v3 }
  0x41   :  { %265 = vmatpush3.bf16.msra.mxu0 %v287_v21 }
  0x42   :  { %266 = vmatprep.subr.bf16.mxu0 %v371_v3 }
  0x45   :  { %267 = vmatpush3.bf16.msra.mxu0 %v288_v22 }
  0xb5   :  { %v53_v6 = vpop.xlane.xlu0 %52 }
  0xb6   :  { %v56_v7 = vmul.f32 0.03125, %v53_v6 }
  0xb8   :  { %v58_v8 = vsub.f32 %v50_v0, %v56_v7 }
  0xb9   :  { %v55_v9 = vpop.xlane.xlu0 %54 }
  0xba   :  { %v57_v10 = vmul.f32 0.03125, %v55_v9  ;;  %v65_v11 = vsel %vm62_vm0, %v58_v8, 0.0 }
  0xbb   :  { %v67_v12 = vmul.f32 %v65_v11, %v65_v11 }
  0xbc   :  { %v59_v13 = vsub.f32 %v51_v1, %v57_v10 }
  0xbd   :  { %69 = vadd.xlane.f32.xlu1 %v67_v12 }
  0xbe   :  { %v66_v14 = vsel %vm62_vm0, %v59_v13, 0.0 }
  0xbf   :  { %v68_v15 = vmul.f32 %v66_v14, %v66_v14 }
  0xc1   :  { %71 = vadd.xlane.f32.xlu1 %v68_v15 }
 0x14a   :  { %v70_v23 = vpop.xlane.xlu1 %69 }
 0x14b   :  { %v73_v24 = vmul.f32 0.03125, %v70_v23 }
 0x14d   :  { %v75_v25 = vadd.f32 1e-05, %v73_v24 }
 0x14e   :  { %v72_v26 = vpop.xlane.xlu1 %71 }
 0x14f   :  { %289 = vrsqrt.f32 %v75_v25  ;;  %v74_v27 = vmul.f32 0.03125, %v72_v26 }
 0x151   :  { %v76_v28 = vadd.f32 1e-05, %v74_v27 }
 0x153   :  { %291 = vrsqrt.f32 %v76_v28 }
 0x159   :  { %v290_v29 = vpop.eup %289 }
 0x15a   :  { %v79_v30 = vmul.f32 %v290_v29, %v65_v11 }
 0x15c   :  { %v88_v34 = vmul.f32 %v232_v31, %v79_v30 }
 0x15d   :  { %v292_v32 = vpop.eup %291 }
 0x15e   :  { %v80_v33 = vmul.f32 %v292_v32, %v66_v14  ;;  %v97_v37 = vadd.f32 %v233_v35, %v88_v34 }
 0x160   :  { %v89_v36 = vmul.f32 %v232_v31, %v80_v33 }
 0x162   :  { %v98_v38 = vadd.f32 %v233_v35, %v89_v36 }
 0x164   :  { %v99_v39 = vpack.c.bf16 %v98_v38, %v97_v37 }
 0x166   :  { %269 = vmatmul.mubr.bf16.vlgmr.msra.gmra.mrb[0].mxu0 %v99_v39 }
 0x239   :  { %v205_v41 = vpop.f32.mrb[0].mxu0 }
 0x23a   :  { %v206_v42 = vadd.f32 %v234_v40, %v205_v41  ;;  %v270_v43 = vpop.f32.mrb[1].mxu0 }
 0x23b   :  { %v208_v44 = vpop.f32.mrb[2].mxu0 }
 0x23c   :  { %212 = vst [vmem:[#allocation7] sm:$0xff] %v206_v42  ;;  %v209_v45 = vadd.f32 %v234_v40, %v208_v44  ;;  %v271_v46 = vpop.f32.mrb[3].mxu0 }
 0x23e   :  { %213 = vst [vmem:[#allocation7 + $0x8] sm:$0xff] %v209_v45 }
 0x23f   :  { %348 = shalt.err (!%p345_p6)
}
 0x240   :  { %s349_s27 = scalar_lea.hbm %s460_s5, 256 }
 0x241   :  { %p350_p7 = scmp.ne.s32.totalorder %s460_s5, %s349_s27  ;;  %p353_p8 = scmp.lt.u32.totalorder %s349_s27, %s460_s5 }
 0x243   :  { %p355_p9 = pnand %p353_p8, %p350_p7 }
 0x245   :  { %358 = shalt.err (!%p355_p9)
}
 0x246   :  { %225 = dma.vmem_to_hbm [thread:$0]  %s220_s26, 256, %s460_s5, [#allocation4], %s366_s28, %s366_s28, %s367_s29  }
 0x247   :  { %363 = dma.done.wait [#allocation4], 256  }
 0x248   :  { %364 = vsyncadd [#allocation4], 4294967040 }
 0x249   :  { %229 = vsyncpa [#allocation3], 1 }
 0x24a   :  { %230 = vsyncpa [#allocation6], 1 }
 0x24b   :  { %231 = vsyncpa [#allocation4], 1 }

</bundles_post_ra>
